<compile_context>
chip_gen: v6e
topology: v6e:2x2x1
jax: 0.10.0
libtpu: 0.0.40
codegen_flags: <defaults>
</compile_context>

<pallas_src>
import functools

import jax
import jax.numpy as jnp
from jax import lax
from jax.experimental import pallas as pl
from jax.experimental.pallas import tpu as pltpu

GAMMA = 2.0
_MIB = 1024 * 1024


def _round_up(x, m):
    return ((x + m - 1) // m) * m


def _focal_kernel(logits_ref, tgt_ref, out_ref, *, hw, tile, pix_blocks, ragged_halves):
    # logits_ref : VMEM (NB, C, TILE) input dtype  -- NB images, one pixel tile (pixels on lanes)
    # tgt_ref    : VMEM (NB, 1, TILE) int32
    # out_ref    : VMEM (1, NB, 1, TILE) float32   -- per-(image, half) lane-dense partial sums
    h = pl.program_id(1)
    p = pl.program_id(2)

    @pl.when(p == 0)
    def _():
        out_ref[...] = jnp.zeros_like(out_ref)

    gb = h * pl.num_programs(2) + p              # global pixel-block index

    def _step():
        logits = logits_ref[...].astype(jnp.float32)           # (NB, C, TILE)
        tgt = tgt_ref[...]                                      # (NB, 1, TILE) int32

        # numerically stable softmax pieces over the class (sublane) axis
        m = jnp.max(logits, axis=1, keepdims=True)              # (NB, 1, TILE)
        e = jnp.exp(logits - m)                                 # (NB, C, TILE)
        s = jnp.sum(e, axis=1, keepdims=True)                   # (NB, 1, TILE)

        # target-class pick via one-hot select (no dynamic gather on TPU)
        onehot = lax.broadcasted_iota(jnp.int32, logits.shape, 1) == tgt
        tgt_logit = jnp.sum(jnp.where(onehot, logits, 0.0), axis=1, keepdims=True)
        e_tgt = jnp.sum(jnp.where(onehot, e, 0.0), axis=1, keepdims=True)

        ce = jnp.log(s) + (m - tgt_logit)        # per-pixel cross entropy
        pt = e_tgt / s                           # == exp(-ce); reuses e, no extra EUP exp
        u = 1.0 - pt
        focal = u * u * ce                       # gamma == 2: square, not lax.pow

        if hw % tile != 0:                       # static check: ragged last pixel block
            pix = gb * tile + lax.broadcasted_iota(jnp.int32, focal.shape, 2)
            focal = jnp.where(pix < hw, focal, 0.0)

        out_ref[...] += focal[None]              # (1, NB, 1, TILE) lane-parallel accumulate

    if ragged_halves:
        # odd number of pixel blocks: second half has one clamped (duplicate) step to skip
        pl.when(gb < pix_blocks)(_step)
    else:
        _step()


@jax.jit
def focal_loss(pred, target):
    """pred: (N, C, H, W) float logits (NCHW, as in PyTorch). target: (N, H, W) int class ids."""
    N, C, H, W = pred.shape
    HW = H * W

    # free (bitcast) reshapes: no transpose, no padding copy
    logits = pred.reshape(N, C, HW)
    tgt = target.reshape(N, 1, HW).astype(jnp.int32)

    itemsize = jnp.dtype(pred.dtype).itemsize
    gran = max(8, 32 // itemsize)                # sublane granule: f32 -> 8, bf16 -> 16
    c_pad = _round_up(C, gran)
    hw_pad = _round_up(HW, 128)

    # --- generation-aware VMEM budget ------------------------------------------------------
    try:
        vmem_phys = int(pltpu.get_tpu_info().vmem_capacity_bytes)
    except Exception:                            # fallback: assume the smallest (v7x, 64 MiB)
        vmem_phys = 64 * _MIB
    budget = min(vmem_phys // 3, 48 * _MIB)

    def working_set(nb, t):                      # double-buffered VMEM footprint per grid step
        logits_b = 2 * nb * c_pad * t * itemsize
        tgt_b = 2 * nb * 8 * t * 4               # (nb, 1, t) int32 pads to 8 sublanes
        out_b = 2 * nb * 8 * t * 4               # (1, nb, 1, t) f32 pads to 8 sublanes
        return logits_b + tgt_b + out_b

    # lane-dense pixel tile: as big as the budget allows, capped at 64K lanes / the image size
    per_lane = 2 * (c_pad * itemsize + 8 * 4 + 8 * 4)
    t_cap = max(128, (budget // per_lane) // 128 * 128)
    tile = int(min(65536, hw_pad, t_cap))
    pix_blocks = pl.cdiv(HW, tile)

    # small images: batch several images per grid step so the per-step DMA stays large
    NB = 1
    if pix_blocks == 1 and N > 1:
        for d in range(1, N + 1):
            if N % d:
                continue
            if working_set(d, tile) > budget:
                break
            NB = d
            if d * C * HW * itemsize >= 4 * _MIB:
                break
    NG = N // NB

    # split the pixel-block axis into two "parallel" halves so both TensorCores (v7x) get work
    halves = 2 if pix_blocks >= 2 else 1
    P = pl.cdiv(pix_blocks, halves)
    ragged_halves = halves * P != pix_blocks
    last_block = pix_blocks - 1

    def pix_idx(h, p):
        gb = h * P + p
        return jnp.minimum(gb, last_block) if ragged_halves else gb

    vmem_limit = int(min(vmem_phys - 16 * _MIB,
                         max(32 * _MIB, working_set(NB, tile) + 8 * _MIB)))

    partials = pl.pallas_call(
        functools.partial(_focal_kernel, hw=HW, tile=tile, pix_blocks=pix_blocks,
                          ragged_halves=ragged_halves),
        out_shape=jax.ShapeDtypeStruct((NG * halves, NB, 1, tile), jnp.float32),
        grid_spec=pltpu.PrefetchScalarGridSpec(
            num_scalar_prefetch=0,
            grid=(NG, halves, P),
            in_specs=[
                pl.BlockSpec((NB, C, tile), lambda n, h, p: (n, 0, pix_idx(h, p))),
                pl.BlockSpec((NB, 1, tile), lambda n, h, p: (n, 0, pix_idx(h, p))),
            ],
            out_specs=pl.BlockSpec((1, NB, 1, tile),
                                   lambda n, h, p: (n * halves + h, 0, 0, 0)),
        ),
        compiler_params=pltpu.CompilerParams(
            dimension_semantics=("parallel", "parallel", "arbitrary"),
            vmem_limit_bytes=vmem_limit),
    )(logits, tgt)

    # single cross-lane reduction + mean, outside the kernel (matches reduction='mean')
    return (jnp.sum(partials) / (N * HW)).astype(jnp.float32)


def _reference(pred, target):
    # pure-JAX reference for sanity checking
    N, C, H, W = pred.shape
    logits = jnp.transpose(pred, (0, 2, 3, 1)).reshape(-1, C).astype(jnp.float32)
    t = target.reshape(-1)
    logp = jax.nn.log_softmax(logits, axis=-1)
    ce = -jnp.take_along_axis(logp, t[:, None], axis=-1)[:, 0]
    pt = jnp.exp(-ce)
    return jnp.mean(((1.0 - pt) ** GAMMA) * ce)


if __name__ == "__main__":
    key = jax.random.PRNGKey(0)
    k1, k2 = jax.random.split(key)

    N, C, H, W = 2, 4, 16, 16
    pred = jax.random.normal(k1, (N, C, H, W), dtype=jnp.float32)
    target = jax.random.randint(k2, (N, H, W), 0, C, dtype=jnp.int32)

    out = focal_loss(pred, target)
    jax.block_until_ready(out)

    ref = _reference(pred, target)
    assert jnp.allclose(out, ref, rtol=1e-5, atol=1e-6), (out, ref)
    print("KERNEL_OK")
</pallas_src>

<mosaic_0001>
module attributes {stable_mosaic.version = 11 : i64} {
  func.func @_focal_kernel(%arg0: i32, %arg1: i32, %arg2: i32, %arg3: memref<2x4x256xf32, #tpu.memory_space<vmem>>, %arg4: memref<2x1x256xi32, #tpu.memory_space<vmem>>, %arg5: memref<1x2x1x256xf32, #tpu.memory_space<vmem>>) attributes {dimension_semantics = [#tpu.dimension_semantics<parallel>, #tpu.dimension_semantics<parallel>, #tpu.dimension_semantics<arbitrary>], iteration_bounds = array<i64: 1, 1, 1>, scalar_prefetch = 0 : i64, scratch_operands = 0 : i64, tpu.core_type = #tpu.core_type<tc>, window_params = [{transform_indices = @transform_0, window_bounds = array<i64: 2, 4, 256>}, {transform_indices = @transform_1, window_bounds = array<i64: 2, 1, 256>}, {transform_indices = @transform_2, window_bounds = array<i64: 1, 2, 1, 256>}]} {
    %c0_i32 = arith.constant 0 : i32
    %0 = arith.cmpi eq, %arg2, %c0_i32 : i32
    %1 = arith.extui %0 : i1 to i32
    %c0_i32_0 = arith.constant 0 : i32
    %2 = arith.cmpi ne, %1, %c0_i32_0 : i32
    scf.if %2 {
      %cst_20 = arith.constant 0.000000e+00 : f32
      %35 = vector.broadcast %cst_20 : f32 to vector<1x2x1x256xf32>
      %c0_21 = arith.constant 0 : index
      %c0_22 = arith.constant 0 : index
      %c0_23 = arith.constant 0 : index
      %c0_24 = arith.constant 0 : index
      %36 = vector.load %arg5[%c0_21, %c0_22, %c0_23, %c0_24] : memref<1x2x1x256xf32, #tpu.memory_space<vmem>>, vector<1x2x1x256xf32>
      tpu.vector_store %arg5[%c0_21, %c0_22, %c0_23, %c0_24], %35 {strides = array<i32>} : memref<1x2x1x256xf32, #tpu.memory_space<vmem>>, vector<1x2x1x256xf32>,
    } else {
    }
    %c0 = arith.constant 0 : index
    %c0_1 = arith.constant 0 : index
    %c0_2 = arith.constant 0 : index
    %3 = vector.load %arg3[%c0, %c0_1, %c0_2] : memref<2x4x256xf32, #tpu.memory_space<vmem>>, vector<2x4x256xf32>
    %c0_3 = arith.constant 0 : index
    %c0_4 = arith.constant 0 : index
    %c0_5 = arith.constant 0 : index
    %4 = vector.load %arg4[%c0_3, %c0_4, %c0_5] : memref<2x1x256xi32, #tpu.memory_space<vmem>>, vector<2x1x256xi32>
    %cst = arith.constant dense<0xFF800000> : vector<2x256xf32>
    %5 = vector.multi_reduction <maximumf>, %3, %cst [1] : vector<2x4x256xf32> to vector<2x256xf32>
    %6 = vector.shape_cast %5 : vector<2x256xf32> to vector<2x1x256xf32>
    %7 = vector.broadcast %6 : vector<2x1x256xf32> to vector<2x4x256xf32>
    %8 = arith.subf %3, %7 : vector<2x4x256xf32>
    %9 = math.exp %8 : vector<2x4x256xf32>
    %cst_6 = arith.constant dense<0.000000e+00> : vector<2x256xf32>
    %10 = vector.multi_reduction <add>, %9, %cst_6 [1] : vector<2x4x256xf32> to vector<2x256xf32>
    %11 = vector.shape_cast %10 : vector<2x256xf32> to vector<2x1x256xf32>
    %12 = tpu.iota {dimensions = array<i32: 1>} : vector<2x4x256xi32>
    %13 = vector.broadcast %4 : vector<2x1x256xi32> to vector<2x4x256xi32>
    %14 = arith.cmpi eq, %12, %13 : vector<2x4x256xi32>
    %cst_7 = arith.constant 0.000000e+00 : f32
    %15 = vector.broadcast %cst_7 : f32 to vector<2x4x256xf32>
    %16 = arith.select %14, %3, %15 : vector<2x4x256xi1>, vector<2x4x256xf32>
    %cst_8 = arith.constant dense<0.000000e+00> : vector<2x256xf32>
    %17 = vector.multi_reduction <add>, %16, %cst_8 [1] : vector<2x4x256xf32> to vector<2x256xf32>
    %18 = vector.shape_cast %17 : vector<2x256xf32> to vector<2x1x256xf32>
    %cst_9 = arith.constant 0.000000e+00 : f32
    %19 = vector.broadcast %cst_9 : f32 to vector<2x4x256xf32>
    %20 = arith.select %14, %9, %19 : vector<2x4x256xi1>, vector<2x4x256xf32>
    %cst_10 = arith.constant dense<0.000000e+00> : vector<2x256xf32>
    %21 = vector.multi_reduction <add>, %20, %cst_10 [1] : vector<2x4x256xf32> to vector<2x256xf32>
    %22 = vector.shape_cast %21 : vector<2x256xf32> to vector<2x1x256xf32>
    %23 = math.log %11 : vector<2x1x256xf32>
    %24 = arith.subf %6, %18 : vector<2x1x256xf32>
    %25 = arith.addf %23, %24 : vector<2x1x256xf32>
    %26 = arith.divf %22, %11 : vector<2x1x256xf32>
    %cst_11 = arith.constant 1.000000e+00 : f32
    %27 = vector.broadcast %cst_11 : f32 to vector<2x1x256xf32>
    %28 = arith.subf %27, %26 : vector<2x1x256xf32>
    %29 = arith.mulf %28, %28 : vector<2x1x256xf32>
    %30 = arith.mulf %29, %25 : vector<2x1x256xf32>
    %c0_12 = arith.constant 0 : index
    %c0_13 = arith.constant 0 : index
    %c0_14 = arith.constant 0 : index
    %c0_15 = arith.constant 0 : index
    %31 = vector.load %arg5[%c0_12, %c0_13, %c0_14, %c0_15] : memref<1x2x1x256xf32, #tpu.memory_space<vmem>>, vector<1x2x1x256xf32>
    %32 = vector.shape_cast %30 : vector<2x1x256xf32> to vector<1x2x1x256xf32>
    %33 = arith.addf %31, %32 : vector<1x2x1x256xf32>
    %c0_16 = arith.constant 0 : index
    %c0_17 = arith.constant 0 : index
    %c0_18 = arith.constant 0 : index
    %c0_19 = arith.constant 0 : index
    %34 = vector.load %arg5[%c0_16, %c0_17, %c0_18, %c0_19] : memref<1x2x1x256xf32, #tpu.memory_space<vmem>>, vector<1x2x1x256xf32>
    tpu.vector_store %arg5[%c0_16, %c0_17, %c0_18, %c0_19], %33 {strides = array<i32>} : memref<1x2x1x256xf32, #tpu.memory_space<vmem>>, vector<1x2x1x256xf32>,
    return
  }
  func.func @transform_0(%arg0: i32, %arg1: i32, %arg2: i32) -> (i32, i32, i32) {
    %c1_i32 = arith.constant 1 : i32
    %0 = arith.muli %arg1, %c1_i32 : i32
    %1 = arith.addi %0, %arg2 : i32
    %c0_i32 = arith.constant 0 : i32
    %c0_i32_0 = arith.constant 0 : i32
    return %arg0, %c0_i32, %1 : i32, i32, i32
  }
  func.func @transform_1(%arg0: i32, %arg1: i32, %arg2: i32) -> (i32, i32, i32) {
    %c1_i32 = arith.constant 1 : i32
    %0 = arith.muli %arg1, %c1_i32 : i32
    %1 = arith.addi %0, %arg2 : i32
    %c0_i32 = arith.constant 0 : i32
    %c0_i32_0 = arith.constant 0 : i32
    return %arg0, %c0_i32, %1 : i32, i32, i32
  }
  func.func @transform_2(%arg0: i32, %arg1: i32, %arg2: i32) -> (i32, i32, i32, i32) {
    %c1_i32 = arith.constant 1 : i32
    %0 = arith.muli %arg0, %c1_i32 : i32
    %1 = arith.addi %0, %arg1 : i32
    %c0_i32 = arith.constant 0 : i32
    %c0_i32_0 = arith.constant 0 : i32
    %c0_i32_1 = arith.constant 0 : i32
    %c0_i32_2 = arith.constant 0 : i32
    return %1, %c0_i32, %c0_i32_0, %c0_i32_1 : i32, i32, i32, i32
  }
}

</mosaic_0001>

<bundles_post_ra>
// kernel: focal_loss.1
= control target key start
LH: loop header
LB: loop body
LE: loop exit
PB: predicated region body
PF: predicated region fallthrough
CT: control target
= control target key end

     0   :  { %v67_v0 = vlaneseq  ;;  %vm83_vm0 = vcmask 1043456   ;;  %v384_v6 = vmov 0.0   ;;  %s500_s2 = inlined_call_operand.vmem [shape: f32[1,2,1,256], index: 2, kind: output, shape index: {}]   ;;  %s501_s0 = inlined_call_operand.vmem [shape: f32[2,4,256], index: 0, kind: input, shape index: {}]   ;;  %s502_s1 = inlined_call_operand.vmem [shape: s32[2,1,256], index: 1, kind: input, shape index: {}]  }
   0x1   :  { %v73_v1 = vld [vmem:[%s501_s0] sm:$0xff]  ;;  %v74_v2 = vld [vmem:[%s501_s0 + $0x8] sm:$0xff] }
   0x2   :  { %vm407_vm1 = vcmp.lt.s32.totalorder %v67_v0, 256  ;;  %v79_v4 = vcombine.high %v73_v1, %v73_v1  ;;  %v84_v5 = vsel %vm83_vm0, %v73_v1, -inf  ;;  %v80_v8 = vcombine.high %v74_v2, %v74_v2  ;;  %v75_v38 = vld [vmem:[%s502_s1] sm:$0x3]  ;;  %v76_v48 = vld [vmem:[%s502_s1 + $0x2] sm:$0x3] }
   0x3   :  { %71 = vst.msk [vmem:[%s500_s2] sm:$0x3] %vm407_vm1, %v384_v6  ;;  %72 = vst.msk [vmem:[%s500_s2 + $0x2] sm:$0x3] %vm407_vm1, %v384_v6  ;;  %v85_v7 = vrot.slane %v84_v5, 4  ;;  %v98_v9 = vsel %vm83_vm0, %v74_v2, -inf }
   0x4   :  { %v91_v10 = vsel %vm83_vm0, %v79_v4, -inf  ;;  %v99_v11 = vrot.slane %v98_v9, 4  ;;  %v105_v14 = vsel %vm83_vm0, %v80_v8, -inf  ;;  %v425_v29 = vshrl.u32 %v67_v0, 7 }
   0x5   :  { %v86_v12 = vmax.f32 %v84_v5, %v85_v7  ;;  %v92_v13 = vrot.slane %v91_v10, 4  ;;  %v106_v16 = vrot.slane %v105_v14, 4 }
   0x6   :  { %v100_v15 = vmax.f32 %v98_v9, %v99_v11  ;;  %v164_v37 = vsub.s32 0, %v425_v29  ;;  %v168_v44 = vsub.s32 1, %v425_v29 }
   0x7   :  { %v87_v17 = vrot.slane %v86_v12, 2  ;;  %v93_v18 = vmax.f32 %v91_v10, %v92_v13  ;;  %v107_v20 = vmax.f32 %v105_v14, %v106_v16 }
   0x8   :  { %v101_v19 = vrot.slane %v100_v15, 2  ;;  %v165_v43 = vrot.slane %v75_v38, %v164_v37  ;;  %v169_v46 = vrot.slane %v75_v38, %v168_v44  ;;  %v173_v50 = vrot.slane %v76_v48, %v164_v37 }
   0x9   :  { %v88_v21 = vmax.f32 %v86_v12, %v87_v17  ;;  %v94_v22 = vrot.slane %v93_v18, 2  ;;  %v108_v24 = vrot.slane %v107_v20, 2  ;;  %v177_v52 = vrot.slane %v76_v48, %v168_v44 }
   0xa   :  { %v102_v23 = vmax.f32 %v100_v15, %v101_v19  ;;  %vm178_vm2 = vcmp.eq.s32.totalorder %v425_v29, %v165_v43  ;;  %vm179_vm3 = vcmp.eq.s32.totalorder %v425_v29, %v169_v46  ;;  %vm180_vm4 = vcmp.eq.s32.totalorder %v425_v29, %v173_v50 }
   0xb   :  { %v89_v25 = vrot.slane %v88_v21, 1  ;;  %v95_v26 = vmax.f32 %v93_v18, %v94_v22  ;;  %v109_v28 = vmax.f32 %v107_v20, %v108_v24  ;;  %v182_v47 = vsel %vm178_vm2, %v73_v1, 0.0 }
   0xc   :  { %v103_v27 = vrot.slane %v102_v23, 1  ;;  %v186_v49 = vsel %vm83_vm0, %v182_v47, 0.0  ;;  %v183_v51 = vsel %vm179_vm3, %v79_v4, 0.0  ;;  %v184_v55 = vsel %vm180_vm4, %v74_v2, 0.0 }
   0xd   :  { %v427_v30 = vmax.f32 %v88_v21, %v89_v25  ;;  %v96_v31 = vrot.slane %v95_v26, 1  ;;  %v110_v33 = vrot.slane %v109_v28, 1  ;;  %v187_v53 = vrot.slane %v186_v49, 4 }
   0xe   :  { %v429_v32 = vmax.f32 %v102_v23, %v103_v27  ;;  %v193_v54 = vsel %vm83_vm0, %v183_v51, 0.0  ;;  %vm181_vm5 = vcmp.eq.s32.totalorder %v425_v29, %v177_v52  ;;  %v200_v0 = vsel %vm83_vm0, %v184_v55, 0.0 }
   0xf   :  { %v431_v34 = vmax.f32 %v95_v26, %v96_v31  ;;  %v433_v35 = vmax.f32 %v109_v28, %v110_v33  ;;  %v188_v57 = vadd.f32 %v187_v53, %v186_v49  ;;  %v194_v58 = vrot.slane %v193_v54, 4 }
  0x10   :  { %v185_v59 = vsel %vm181_vm5, %v80_v8, 0.0  ;;  %v201_v17 = vrot.slane %v200_v0, 4 }
  0x11   :  { %v116_v36 = vcombine.low %v427_v30, %v431_v34  ;;  %v117_v39 = vcombine.low %v429_v32, %v433_v35  ;;  %v207_v9 = vsel %vm83_vm0, %v185_v59, 0.0  ;;  %v195_v33 = vadd.f32 %v194_v58, %v193_v54 }
  0x12   :  { %v208_v25 = vrot.slane %v207_v9, 4 }
  0x13   :  { %v120_v40 = vsub.f32 %v73_v1, %v116_v36  ;;  %v121_v41 = vsub.f32 %v74_v2, %v117_v39  ;;  %v196_v51 = vrot.slane %v195_v33, 2 }
  0x14   :  { %v209_v50 = vadd.f32 %v208_v25, %v207_v9  ;;  %v385_v25 = vmov 1966171168  }
  0x15   :  { %v122_v42 = vmul.f32 1.442695, %v120_v40  ;;  %v124_v45 = vmul.f32 1.442695, %v121_v41  ;;  %v189_v41 = vrot.slane %v188_v57, 2 }
  0x17   :  { %364 = vpow2.f32 %v122_v42 }
  0x18   :  { %366 = vpow2.f32 %v124_v45  ;;  %v202_v45 = vadd.f32 %v201_v17, %v200_v0 }
  0x24   :  { %v365_v56 = vpop.eup %364 }
  0x25   :  { %v367_v60 = vpop.eup %366  ;;  %v128_v61 = vcombine.high %v365_v56, %v365_v56  ;;  %v132_v62 = vsel %vm83_vm0, %v365_v56, 0.0  ;;  %v214_v63 = vsel %vm178_vm2, %v365_v56, 0.0  ;;  %v190_v56 = vadd.f32 %v189_v41, %v188_v57 }
  0x26   :  { %v133_v1 = vrot.slane %v132_v62, 4  ;;  %v218_v2 = vsel %vm83_vm0, %v214_v63, 0.0  ;;  %v129_v4 = vcombine.high %v367_v60, %v367_v60  ;;  %v146_v5 = vsel %vm83_vm0, %v367_v60, 0.0 }
  0x27   :  { %v139_v6 = vsel %vm83_vm0, %v128_v61, 0.0  ;;  %v215_v7 = vsel %vm179_vm3, %v128_v61, 0.0  ;;  %v147_v8 = vrot.slane %v146_v5, 4  ;;  %v219_v14 = vrot.slane %v218_v2, 4 }
  0x28   :  { %v134_v10 = vadd.f32 %v133_v1, %v132_v62  ;;  %v140_v11 = vrot.slane %v139_v6, 4  ;;  %v225_v12 = vsel %vm83_vm0, %v215_v7, 0.0  ;;  %v153_v13 = vsel %vm83_vm0, %v129_v4, 0.0 }
  0x29   :  { %v148_v15 = vadd.f32 %v147_v8, %v146_v5  ;;  %v154_v16 = vrot.slane %v153_v13, 4  ;;  %v216_v20 = vsel %vm180_vm4, %v367_v60, 0.0  ;;  %v217_v21 = vsel %vm181_vm5, %v129_v4, 0.0 }
  0x2a   :  { %v135_v18 = vrot.slane %v134_v10, 2  ;;  %v141_v19 = vadd.f32 %v140_v11, %v139_v6  ;;  %v226_v22 = vrot.slane %v225_v12, 4  ;;  %v232_v28 = vsel %vm83_vm0, %v216_v20, 0.0 }
  0x2b   :  { %v149_v23 = vrot.slane %v148_v15, 2  ;;  %v155_v24 = vadd.f32 %v154_v16, %v153_v13  ;;  %v239_v31 = vsel %vm83_vm0, %v217_v21, 0.0  ;;  %v220_v36 = vadd.f32 %v219_v14, %v218_v2 }
  0x2c   :  { %v136_v26 = vadd.f32 %v135_v18, %v134_v10  ;;  %v142_v27 = vrot.slane %v141_v19, 2  ;;  %v233_v42 = vrot.slane %v232_v28, 4  ;;  %v227_v43 = vadd.f32 %v226_v22, %v225_v12 }
  0x2d   :  { %v150_v37 = vadd.f32 %v149_v23, %v148_v15  ;;  %v156_v38 = vrot.slane %v155_v24, 2  ;;  %v240_v46 = vrot.slane %v239_v31, 4  ;;  %v221_v52 = vrot.slane %v220_v36, 2 }
  0x2e   :  { %v137_v39 = vrot.slane %v136_v26, 1  ;;  %v143_v40 = vadd.f32 %v142_v27, %v141_v19  ;;  %v234_v54 = vadd.f32 %v233_v42, %v232_v28  ;;  %v228_v58 = vrot.slane %v227_v43, 2 }
  0x2f   :  { %v157_v44 = vadd.f32 %v156_v38, %v155_v24  ;;  %v151_v49 = vrot.slane %v150_v37, 1  ;;  %v241_v59 = vadd.f32 %v240_v46, %v239_v31  ;;  %v203_v61 = vrot.slane %v202_v45, 2 }
  0x30   :  { %v138_v47 = vadd.f32 %v137_v39, %v136_v26  ;;  %v144_v48 = vrot.slane %v143_v40, 1  ;;  %v210_v62 = vrot.slane %v209_v50, 2  ;;  %v197_v63 = vadd.f32 %v196_v51, %v195_v33 }
  0x31   :  { %v158_v53 = vrot.slane %v157_v44, 1  ;;  %v152_v60 = vadd.f32 %v151_v49, %v150_v37  ;;  %v222_v0 = vadd.f32 %v221_v52, %v220_v36  ;;  %v235_v2 = vrot.slane %v234_v54, 2 }
  0x32   :  { %v145_v55 = vadd.f32 %v144_v48, %v143_v40  ;;  %368 = vlog2.f32 %v138_v47  ;;  %v191_v4 = vrot.slane %v190_v56, 1  ;;  %v229_v5 = vadd.f32 %v228_v58, %v227_v43 }
  0x33   :  { %370 = vrcp.f32 %v138_v47  ;;  %v159_v1 = vadd.f32 %v158_v53, %v157_v44  ;;  %v242_v6 = vrot.slane %v241_v59, 2  ;;  %v204_v7 = vadd.f32 %v203_v61, %v202_v45 }
  0x34   :  { %372 = vlog2.f32 %v145_v55  ;;  %v211_v8 = vadd.f32 %v210_v62, %v209_v50  ;;  %v198_v57 = vrot.slane %v197_v63, 1  ;;  %v223_v9 = vrot.slane %v222_v0, 1 }
  0x35   :  { %374 = vrcp.f32 %v145_v55  ;;  %v236_v10 = vadd.f32 %v235_v2, %v234_v54  ;;  %v192_v11 = vadd.f32 %v191_v4, %v190_v56  ;;  %v230_v12 = vrot.slane %v229_v5, 1 }
  0x36   :  { %376 = vlog2.f32 %v152_v60  ;;  %v243_v13 = vadd.f32 %v242_v6, %v241_v59  ;;  %v205_v14 = vrot.slane %v204_v7, 1  ;;  %v212_v15 = vrot.slane %v211_v8, 1  ;;  %v282_v6 = vld [vmem:[%s500_s2] sm:$0x3] }
  0x37   :  { %378 = vlog2.f32 %v159_v1  ;;  %v199_v16 = vadd.f32 %v198_v57, %v197_v63  ;;  %v224_v17 = vadd.f32 %v223_v9, %v222_v0  ;;  %v237_v18 = vrot.slane %v236_v10, 1 }
  0x38   :  { %380 = vrcp.f32 %v152_v60  ;;  %v231_v20 = vadd.f32 %v230_v12, %v229_v5  ;;  %v254_v21 = vsub.f32 %v427_v30, %v192_v11  ;;  %v244_v22 = vrot.slane %v243_v13, 1 }
  0x39   :  { %382 = vrcp.f32 %v159_v1  ;;  %v290_v26 = vunpack.c.l.s4 %v385_v25  ;;  %v206_v27 = vadd.f32 %v205_v14, %v204_v7  ;;  %v213_v28 = vadd.f32 %v212_v15, %v211_v8 }
  0x3a   :  { %v255_v33 = vsub.f32 %v431_v34, %v199_v16  ;;  %v238_v39 = vadd.f32 %v237_v18, %v236_v10  ;;  %v245_v44 = vadd.f32 %v244_v22, %v243_v13 }
  0x3b   :  { %v291_v45 = vunpack.c.0.s8 %v290_v26  ;;  %v256_v47 = vsub.f32 %v429_v32, %v206_v27  ;;  %v257_v48 = vsub.f32 %v433_v35, %v213_v28 }
  0x3d   :  { %v294_v62 = vsub.s32 %v291_v45, %v425_v29  ;;  %v283_v29 = vld [vmem:[%s500_s2 + $0x2] sm:$0x3] }
  0x3f   :  { %v369_v19 = vpop.eup %368 }
  0x40   :  { %v371_v23 = vpop.eup %370  ;;  %v247_v24 = vmul.f32 0.6931472, %v369_v19 }
  0x41   :  { %v373_v31 = vpop.eup %372  ;;  %v263_v36 = vmul.f32 %v371_v23, %v224_v17 }
  0x42   :  { %v375_v37 = vpop.eup %374  ;;  %v249_v38 = vmul.f32 0.6931472, %v373_v31  ;;  %v258_v41 = vadd.f32 %v254_v21, %v247_v24 }
  0x43   :  { %v377_v40 = vpop.eup %376  ;;  %v265_v42 = vmul.f32 %v375_v37, %v231_v20  ;;  %v270_v43 = vsub.f32 1.0, %v263_v36 }
  0x44   :  { %v379_v30 = vpop.eup %378  ;;  %v251_v46 = vmul.f32 0.6931472, %v377_v40  ;;  %v259_v50 = vadd.f32 %v255_v33, %v249_v38 }
  0x45   :  { %v381_v49 = vpop.eup %380  ;;  %v271_v51 = vsub.f32 1.0, %v265_v42  ;;  %v274_v34 = vmul.f32 %v270_v43, %v270_v43  ;;  %v253_v52 = vmul.f32 0.6931472, %v379_v30 }
  0x46   :  { %v383_v53 = vpop.eup %382  ;;  %v267_v55 = vmul.f32 %v381_v49, %v238_v39  ;;  %v260_v59 = vadd.f32 %v256_v47, %v251_v46 }
  0x47   :  { %v275_v54 = vmul.f32 %v271_v51, %v271_v51  ;;  %v278_v56 = vmul.f32 %v274_v34, %v258_v41  ;;  %v269_v58 = vmul.f32 %v383_v53, %v245_v44  ;;  %v261_v63 = vadd.f32 %v257_v48, %v253_v52 }
  0x48   :  { %v272_v60 = vsub.f32 1.0, %v267_v55 }
  0x49   :  { %v279_v61 = vmul.f32 %v275_v54, %v259_v50  ;;  %v273_v0 = vsub.f32 1.0, %v269_v58 }
  0x4a   :  { %v276_v32 = vmul.f32 %v272_v60, %v272_v60 }
  0x4b   :  { %v288_v1 = vcombine.low %v278_v56, %v279_v61  ;;  %v277_v35 = vmul.f32 %v273_v0, %v273_v0 }
  0x4c   :  { %v280_v2 = vmul.f32 %v276_v32, %v260_v59 }
  0x4d   :  { %v295_v4 = vrot.slane %v288_v1, %v294_v62  ;;  %v281_v5 = vmul.f32 %v277_v35, %v261_v63 }
  0x4f   :  { %v302_v7 = vrot.slane %v295_v4, %v294_v62  ;;  %v303_v8 = vcombine.low %v280_v2, %v281_v5 }
  0x51   :  { %v320_v57 = vadd.f32 %v302_v7, %v282_v6  ;;  %v310_v9 = vrot.slane %v303_v8, %v294_v62 }
  0x53   :  { %326 = vst.msk [vmem:[%s500_s2] sm:$0x3] %vm407_vm1, %v320_v57  ;;  %v317_v10 = vrot.slane %v310_v9, %v294_v62 }
  0x55   :  { %v321_v11 = vadd.f32 %v317_v10, %v283_v29 }
  0x57   :  { %327 = vst.msk [vmem:[%s500_s2 + $0x2] sm:$0x3] %vm407_vm1, %v321_v11 }

</bundles_post_ra>
